<compile_context>
chip_gen: v5e
topology: v5e:2x2
jax: 0.10.0
libtpu: 0.0.40
codegen_flags: <defaults>
</compile_context>

<pallas_src>
import math

import jax
import jax.numpy as jnp
from jax.experimental import pallas as pl
from jax.experimental.pallas import tpu as pltpu


# ----------------------------- in-kernel helpers -----------------------------

def _shifted_taps(x):
    """Build the [prev | cur | next] circularly shifted channel stack.

    x : (Bt, L, C) tile (sublane axis = L, lane axis = C)
    returns (Bt*L, 3*C) ready for a single MXU dot against the folded weight.

    The circular wrap is per batch element (shift along axis=1); this is only
    correct because every block carries the full sequence length L.  The shifted
    copies are tiny ((Bt, 8, ~7) f32), so a sublane concat costs the same as an
    XLU pltpu.roll here and is guaranteed to lower.
    """
    x_prev = jnp.concatenate([x[:, -1:, :], x[:, :-1, :]], axis=1)   # x[(l-1) mod L]
    x_next = jnp.concatenate([x[:, 1:, :], x[:, :1, :]], axis=1)     # x[(l+1) mod L]
    x3 = jnp.concatenate([x_prev, x, x_next], axis=-1)               # (Bt, L, 3C)
    bt, l, c3 = x3.shape
    return x3.reshape(bt * l, c3)


def _encoder_kernel(x_ref, sales_ref, pe_lo_ref, pe_hi_ref, w_ref, b_ref, out_ref):
    bt, l, _ = x_ref.shape
    ds = sales_ref.shape[-1]
    d_feat = pe_hi_ref.shape[-1]

    # One folded dot computes BOTH the feature conv (cols :d_feat) and the
    # epidemic conv (col d_feat) thanks to the block-diagonal weight.
    y = jnp.dot(_shifted_taps(x_ref[...]), w_ref[...],
                preferred_element_type=jnp.float32) + b_ref[...]
    y = y.reshape(bt, l, d_feat + 1)
    feat = y[..., :d_feat]                 # (Bt, L, d_feat)
    epi = y[..., d_feat:]                  # (Bt, L, 1); lane broadcast == repeat_interleave

    # Write the two output lane ranges directly; no (L, 512) concat intermediate
    # and no in-kernel PE slice at the non-128-aligned lane ds.
    out_ref[:, :, :ds] = (sales_ref[...] + pe_lo_ref[...] + epi).astype(out_ref.dtype)
    out_ref[:, :, ds:] = (feat + pe_hi_ref[...] + epi).astype(out_ref.dtype)


def _decoder_kernel(x_ref, sales_ref, pe_lo_ref, pe_hi_ref, w_ref, b_ref, out_ref):
    bt, l, _ = x_ref.shape
    ds = sales_ref.shape[-1]
    d_feat = pe_hi_ref.shape[-1]

    y = jnp.dot(_shifted_taps(x_ref[...]), w_ref[...],
                preferred_element_type=jnp.float32) + b_ref[...]
    feat = y.reshape(bt, l, d_feat)

    out_ref[:, :, :ds] = (sales_ref[...] + pe_lo_ref[...]).astype(out_ref.dtype)
    out_ref[:, :, ds:] = (feat + pe_hi_ref[...]).astype(out_ref.dtype)


# -------------------------------- wrapper -------------------------------------

def data_embedding_forward(params, sales, history_features, future_features,
                           epidemic_features=None, *, embed_type="encoder",
                           out_dtype=jnp.float32, batch_tile=32):
    w_feat, b_feat = params["w_feat"], params["b_feat"]      # (3, c_in, d_feat), (1, d_feat)
    pe_full = params["pe"]                                   # (max_len, 512)

    if embed_type == "decoder":
        days = future_features.shape[1] - history_features.shape[1]
        zeros = jnp.zeros((history_features.shape[0], days, history_features.shape[2]),
                          history_features.dtype)
        history_features = jnp.concatenate([history_features, zeros], axis=1)

    B, L, _ = future_features.shape
    c_in = history_features.shape[2] + future_features.shape[2]
    ds = sales.shape[2]
    d_feat = w_feat.shape[2]
    d_out = ds + d_feat
    assert d_out == pe_full.shape[1], "sales + feature-embed width must equal PE d_model (512)"

    # Pre-split PE so the kernel never slices at the (non-128-aligned) lane ds.
    pe_lo = pe_full[:L, :ds]                                 # (L, ds)
    pe_hi = pe_full[:L, ds:]                                 # (L, d_feat)

    if embed_type == "encoder":
        w_epi, b_epi = params["w_epi"], params["b_epi"]      # (3, c_epi, 1), (1, 1)
        c_epi = epidemic_features.shape[2]
        c_tot = c_in + c_epi
        n_conv = d_feat + 1
        # channels: [history | future | epidemic]
        x_all = jnp.concatenate([history_features, future_features, epidemic_features],
                                axis=2)
        # Fold both convolutions (3 taps each) into a single block-diagonal weight
        # (tap-major rows, matching the [prev|cur|next] channel stack in the kernel).
        taps = []
        for k in range(3):
            wk = jnp.zeros((c_tot, n_conv), jnp.float32)
            wk = wk.at[:c_in, :d_feat].set(w_feat[k])
            wk = wk.at[c_in:, d_feat:].set(w_epi[k])
            taps.append(wk)
        w_comb = jnp.concatenate(taps, axis=0)               # (3*c_tot, d_feat+1)
        b_comb = jnp.concatenate([b_feat, b_epi], axis=1)    # (1, d_feat+1)
        kernel = _encoder_kernel
    else:
        c_tot = c_in
        n_conv = d_feat
        x_all = jnp.concatenate([history_features, future_features], axis=2)
        w_comb = w_feat.reshape(3 * c_in, d_feat)            # tap-major rows
        b_comb = b_feat
        kernel = _decoder_kernel

    # Batch tiling: many batch elements per grid step amortize per-step pipeline
    # overhead; once B > batch_tile there are >=2 "parallel" steps for v7x's 2 TCs.
    bt = min(B, batch_tile)
    nb = pl.cdiv(B, bt)
    b_pad = nb * bt
    if b_pad != B:
        pad = ((0, b_pad - B), (0, 0), (0, 0))
        x_all = jnp.pad(x_all, pad)
        sales_in = jnp.pad(sales, pad)
    else:
        sales_in = sales

    grid_spec = pltpu.PrefetchScalarGridSpec(
        num_scalar_prefetch=0,
        grid=(nb,),
        in_specs=[
            pl.BlockSpec((bt, L, c_tot), lambda i: (i, 0, 0)),
            pl.BlockSpec((bt, L, ds), lambda i: (i, 0, 0)),
            pl.BlockSpec((L, ds), lambda i: (0, 0)),
            pl.BlockSpec((L, d_feat), lambda i: (0, 0)),
            pl.BlockSpec((3 * c_tot, n_conv), lambda i: (0, 0)),
            pl.BlockSpec((1, n_conv), lambda i: (0, 0)),
        ],
        out_specs=pl.BlockSpec((bt, L, d_out), lambda i: (i, 0, 0)),
    )

    out_itemsize = jnp.dtype(out_dtype).itemsize
    cost = pl.CostEstimate(
        flops=2 * b_pad * L * (3 * c_tot) * n_conv,
        transcendentals=0,
        bytes_accessed=(b_pad * L * (c_tot + ds) * 4            # inputs
                        + L * d_out * 4                         # positional embedding
                        + b_pad * L * d_out * out_itemsize),    # output (dominant)
    )

    out = pl.pallas_call(
        kernel,
        out_shape=jax.ShapeDtypeStruct((b_pad, L, d_out), out_dtype),
        grid_spec=grid_spec,
        compiler_params=pltpu.CompilerParams(dimension_semantics=("parallel",)),
        cost_estimate=cost,
    )(x_all, sales_in, pe_lo, pe_hi, w_comb, b_comb)

    return out[:B] if b_pad != B else out


# ------------------------ parameter construction (glue) -----------------------

def make_positional_embedding(max_len=100, d_model=512):
    position = jnp.arange(max_len, dtype=jnp.float32)[:, None]
    div_term = jnp.exp(jnp.arange(0, d_model, 2, dtype=jnp.float32)
                       * (-math.log(10000.0) / d_model))
    pe = jnp.zeros((max_len, d_model), jnp.float32)
    pe = pe.at[:, 0::2].set(jnp.sin(position * div_term))
    pe = pe.at[:, 1::2].set(jnp.cos(position * div_term))
    return pe


def init_params(key, c_in, d_feat, c_epi):
    k1, k2, k3, k4 = jax.random.split(key, 4)
    # Conv weights: kaiming_normal_, fan_in = c_in * kernel_size, gain = sqrt(2)
    fan_feat = c_in * 3
    w_feat = jax.random.normal(k1, (3, c_in, d_feat), jnp.float32) * math.sqrt(2.0 / fan_feat)
    b_feat = jax.random.uniform(k2, (1, d_feat), jnp.float32,
                                -1.0 / math.sqrt(fan_feat), 1.0 / math.sqrt(fan_feat))
    fan_epi = c_epi * 3
    w_epi = jax.random.normal(k3, (3, c_epi, 1), jnp.float32) * math.sqrt(2.0 / fan_epi)
    b_epi = jax.random.uniform(k4, (1, 1), jnp.float32,
                               -1.0 / math.sqrt(fan_epi), 1.0 / math.sqrt(fan_epi))
    return dict(w_feat=w_feat, b_feat=b_feat, w_epi=w_epi, b_epi=b_epi,
                pe=make_positional_embedding())


# ------------------------------ pure-JAX reference ----------------------------

def _circ_conv_ref(x, w, b):
    xp = jnp.roll(x, 1, axis=1)
    xn = jnp.roll(x, -1, axis=1)
    return (jnp.einsum("blc,cd->bld", xp, w[0])
            + jnp.einsum("blc,cd->bld", x, w[1])
            + jnp.einsum("blc,cd->bld", xn, w[2]) + b)


def forward_ref(params, sales, history, future, epidemic=None, embed_type="encoder"):
    if embed_type == "decoder":
        days = future.shape[1] - history.shape[1]
        zeros = jnp.zeros((history.shape[0], days, history.shape[2]), history.dtype)
        history = jnp.concatenate([history, zeros], axis=1)
    other = jnp.concatenate([history, future], axis=2)
    feat = _circ_conv_ref(other, params["w_feat"], params["b_feat"])
    out = jnp.concatenate([sales, feat], axis=2)
    out = out + params["pe"][None, :out.shape[1], :]
    if embed_type == "encoder":
        epi = _circ_conv_ref(epidemic, params["w_epi"], params["b_epi"])   # (B, L, 1)
        out = out + epi                                                    # == repeat_interleave + add
    return out


# ----------------------------------- main --------------------------------------

if __name__ == "__main__":
    key = jax.random.PRNGKey(0)
    B, L = 2, 8
    H_FEAT, F_FEAT = 2, 2          # config['Other_features_in'] = 4
    D_FEAT = 32                    # config['Other_features_out']
    C_EPI = 3                      # config['Epidemic_features']
    DS = 512 - D_FEAT              # sales width so that concat width == PE d_model (512)

    kp, ks, kh, kf, ke = jax.random.split(key, 5)
    params = init_params(kp, H_FEAT + F_FEAT, D_FEAT, C_EPI)

    sales = jax.random.normal(ks, (B, L, DS), jnp.float32)
    history = jax.random.normal(kh, (B, L, H_FEAT), jnp.float32)
    future = jax.random.normal(kf, (B, L, F_FEAT), jnp.float32)
    epidemic = jax.random.normal(ke, (B, L, C_EPI), jnp.float32)

    # encoder path
    out_enc = jax.block_until_ready(
        data_embedding_forward(params, sales, history, future, epidemic, embed_type="encoder"))
    ref_enc = forward_ref(params, sales, history, future, epidemic, "encoder")
    assert out_enc.shape == (B, L, 512)
    assert jnp.allclose(out_enc, ref_enc, atol=1e-4, rtol=1e-4)

    # decoder path (history shorter than future, zero-padded; no epidemic term)
    Lh = 6
    history_d = jax.random.normal(kh, (B, Lh, H_FEAT), jnp.float32)
    out_dec = jax.block_until_ready(
        data_embedding_forward(params, sales, history_d, future, embed_type="decoder"))
    ref_dec = forward_ref(params, sales, history_d, future, None, "decoder")
    assert jnp.allclose(out_dec, ref_dec, atol=1e-4, rtol=1e-4)

    print("KERNEL_OK")
</pallas_src>

<mosaic_0001>
module attributes {stable_mosaic.version = 11 : i64} {
  func.func @_encoder_kernel(%arg0: i32, %arg1: memref<2x8x7xf32, #tpu.memory_space<vmem>>, %arg2: memref<2x8x480xf32, #tpu.memory_space<vmem>>, %arg3: memref<8x480xf32, #tpu.memory_space<vmem>>, %arg4: memref<8x32xf32, #tpu.memory_space<vmem>>, %arg5: memref<21x33xf32, #tpu.memory_space<vmem>>, %arg6: memref<1x33xf32, #tpu.memory_space<vmem>>, %arg7: memref<2x8x512xf32, #tpu.memory_space<vmem>>) attributes {dimension_semantics = [#tpu.dimension_semantics<parallel>], iteration_bounds = array<i64: 1>, scalar_prefetch = 0 : i64, scratch_operands = 0 : i64, tpu.core_type = #tpu.core_type<tc>, window_params = [{transform_indices = @transform_0, window_bounds = array<i64: 2, 8, 7>}, {transform_indices = @transform_1, window_bounds = array<i64: 2, 8, 480>}, {pipeline_mode = #tpu.pipeline_mode<synchronous>, transform_indices = @transform_2, window_bounds = array<i64: 8, 480>}, {pipeline_mode = #tpu.pipeline_mode<synchronous>, transform_indices = @transform_3, window_bounds = array<i64: 8, 32>}, {pipeline_mode = #tpu.pipeline_mode<synchronous>, transform_indices = @transform_4, window_bounds = array<i64: 21, 33>}, {pipeline_mode = #tpu.pipeline_mode<synchronous>, transform_indices = @transform_5, window_bounds = array<i64: 1, 33>}, {transform_indices = @transform_6, window_bounds = array<i64: 2, 8, 512>}]} {
    %c0 = arith.constant 0 : index
    %c0_0 = arith.constant 0 : index
    %c0_1 = arith.constant 0 : index
    %0 = vector.load %arg1[%c0, %c0_0, %c0_1] : memref<2x8x7xf32, #tpu.memory_space<vmem>>, vector<2x8x7xf32>
    %1 = vector.extract_strided_slice %0 {offsets = [0, 7, 0], sizes = [2, 1, 7], strides = [1, 1, 1]} : vector<2x8x7xf32> to vector<2x1x7xf32>
    %2 = vector.extract_strided_slice %0 {offsets = [0, 0, 0], sizes = [2, 7, 7], strides = [1, 1, 1]} : vector<2x8x7xf32> to vector<2x7x7xf32>
    %3 = tpu.concatenate %1, %2 in 1 : vector<2x1x7xf32>, vector<2x7x7xf32> -> vector<2x8x7xf32>
    %4 = vector.extract_strided_slice %0 {offsets = [0, 1, 0], sizes = [2, 7, 7], strides = [1, 1, 1]} : vector<2x8x7xf32> to vector<2x7x7xf32>
    %5 = vector.extract_strided_slice %0 {offsets = [0, 0, 0], sizes = [2, 1, 7], strides = [1, 1, 1]} : vector<2x8x7xf32> to vector<2x1x7xf32>
    %6 = tpu.concatenate %4, %5 in 1 : vector<2x7x7xf32>, vector<2x1x7xf32> -> vector<2x8x7xf32>
    %7 = tpu.concatenate %3, %0, %6 in 2 : vector<2x8x7xf32>, vector<2x8x7xf32>, vector<2x8x7xf32> -> vector<2x8x21xf32>
    %8 = vector.shape_cast %7 : vector<2x8x21xf32> to vector<16x21xf32>
    %c0_2 = arith.constant 0 : index
    %c0_3 = arith.constant 0 : index
    %9 = vector.load %arg5[%c0_2, %c0_3] : memref<21x33xf32, #tpu.memory_space<vmem>>, vector<21x33xf32>
    %cst = arith.constant dense<0.000000e+00> : vector<16x33xf32>
    %10 = tpu.matmul %8, %9, %cst {dimension_numbers = #tpu.dot_dimension_numbers<[1], [0], [0], [1], [0, 0, 1, 1], [], []>} : vector<16x21xf32>, vector<21x33xf32>, vector<16x33xf32> -> vector<16x33xf32>
    %c0_4 = arith.constant 0 : index
    %c0_5 = arith.constant 0 : index
    %11 = vector.load %arg6[%c0_4, %c0_5] : memref<1x33xf32, #tpu.memory_space<vmem>>, vector<1x33xf32>
    %12 = vector.broadcast %11 : vector<1x33xf32> to vector<16x33xf32>
    %13 = arith.addf %10, %12 : vector<16x33xf32>
    %14 = vector.shape_cast %13 : vector<16x33xf32> to vector<2x8x33xf32>
    %15 = vector.extract_strided_slice %14 {offsets = [0, 0, 0], sizes = [2, 8, 32], strides = [1, 1, 1]} : vector<2x8x33xf32> to vector<2x8x32xf32>
    %16 = vector.extract_strided_slice %14 {offsets = [0, 0, 32], sizes = [2, 8, 1], strides = [1, 1, 1]} : vector<2x8x33xf32> to vector<2x8x1xf32>
    %c0_6 = arith.constant 0 : index
    %c0_7 = arith.constant 0 : index
    %c0_8 = arith.constant 0 : index
    %17 = vector.load %arg2[%c0_6, %c0_7, %c0_8] : memref<2x8x480xf32, #tpu.memory_space<vmem>>, vector<2x8x480xf32>
    %c0_9 = arith.constant 0 : index
    %c0_10 = arith.constant 0 : index
    %18 = vector.load %arg3[%c0_9, %c0_10] : memref<8x480xf32, #tpu.memory_space<vmem>>, vector<8x480xf32>
    %19 = vector.shape_cast %18 : vector<8x480xf32> to vector<1x8x480xf32>
    %20 = vector.broadcast %19 : vector<1x8x480xf32> to vector<2x8x480xf32>
    %21 = arith.addf %17, %20 : vector<2x8x480xf32>
    %22 = vector.broadcast %16 : vector<2x8x1xf32> to vector<2x8x480xf32>
    %23 = arith.addf %21, %22 : vector<2x8x480xf32>
    %c0_11 = arith.constant 0 : index
    %c0_12 = arith.constant 0 : index
    %c0_13 = arith.constant 0 : index
    %24 = vector.load %arg7[%c0_11, %c0_12, %c0_13] : memref<2x8x512xf32, #tpu.memory_space<vmem>>, vector<2x8x480xf32>
    tpu.vector_store %arg7[%c0_11, %c0_12, %c0_13], %23 {strides = array<i32>} : memref<2x8x512xf32, #tpu.memory_space<vmem>>, vector<2x8x480xf32>,
    %c0_14 = arith.constant 0 : index
    %c0_15 = arith.constant 0 : index
    %25 = vector.load %arg4[%c0_14, %c0_15] : memref<8x32xf32, #tpu.memory_space<vmem>>, vector<8x32xf32>
    %26 = vector.shape_cast %25 : vector<8x32xf32> to vector<1x8x32xf32>
    %27 = vector.broadcast %26 : vector<1x8x32xf32> to vector<2x8x32xf32>
    %28 = arith.addf %15, %27 : vector<2x8x32xf32>
    %29 = vector.broadcast %16 : vector<2x8x1xf32> to vector<2x8x32xf32>
    %30 = arith.addf %28, %29 : vector<2x8x32xf32>
    %c0_16 = arith.constant 0 : index
    %c0_17 = arith.constant 0 : index
    %c480 = arith.constant 480 : index
    %31 = vector.load %arg7[%c0_16, %c0_17, %c480] : memref<2x8x512xf32, #tpu.memory_space<vmem>>, vector<2x8x32xf32>
    tpu.vector_store %arg7[%c0_16, %c0_17, %c480], %30 {strides = array<i32>} : memref<2x8x512xf32, #tpu.memory_space<vmem>>, vector<2x8x32xf32>,
    return
  }
  func.func @transform_0(%arg0: i32) -> (i32, i32, i32) {
    %c0_i32 = arith.constant 0 : i32
    %c0_i32_0 = arith.constant 0 : i32
    %c0_i32_1 = arith.constant 0 : i32
    return %arg0, %c0_i32, %c0_i32_0 : i32, i32, i32
  }
  func.func @transform_1(%arg0: i32) -> (i32, i32, i32) {
    %c0_i32 = arith.constant 0 : i32
    %c0_i32_0 = arith.constant 0 : i32
    %c0_i32_1 = arith.constant 0 : i32
    return %arg0, %c0_i32, %c0_i32_0 : i32, i32, i32
  }
  func.func @transform_2(%arg0: i32) -> (i32, i32) {
    %c0_i32 = arith.constant 0 : i32
    %c0_i32_0 = arith.constant 0 : i32
    %c0_i32_1 = arith.constant 0 : i32
    return %c0_i32, %c0_i32_0 : i32, i32
  }
  func.func @transform_3(%arg0: i32) -> (i32, i32) {
    %c0_i32 = arith.constant 0 : i32
    %c0_i32_0 = arith.constant 0 : i32
    %c0_i32_1 = arith.constant 0 : i32
    return %c0_i32, %c0_i32_0 : i32, i32
  }
  func.func @transform_4(%arg0: i32) -> (i32, i32) {
    %c0_i32 = arith.constant 0 : i32
    %c0_i32_0 = arith.constant 0 : i32
    %c0_i32_1 = arith.constant 0 : i32
    return %c0_i32, %c0_i32_0 : i32, i32
  }
  func.func @transform_5(%arg0: i32) -> (i32, i32) {
    %c0_i32 = arith.constant 0 : i32
    %c0_i32_0 = arith.constant 0 : i32
    %c0_i32_1 = arith.constant 0 : i32
    return %c0_i32, %c0_i32_0 : i32, i32
  }
  func.func @transform_6(%arg0: i32) -> (i32, i32, i32) {
    %c0_i32 = arith.constant 0 : i32
    %c0_i32_0 = arith.constant 0 : i32
    %c0_i32_1 = arith.constant 0 : i32
    return %arg0, %c0_i32, %c0_i32_0 : i32, i32, i32
  }
}

</mosaic_0001>

<bundles_post_ra>
// kernel: tpu_custom_call.1
= control target key start
LH: loop header
LB: loop body
LE: loop exit
PB: predicated region body
PF: predicated region fallthrough
CT: control target
= control target key end

     0   :  { %11 = vsyncpa [#allocation3], 0  ;;  %s394_s0 = inlined_call_operand.vmem [shape: f32[2,8,7], index: 0, kind: input, shape index: {}]   ;;  %s395_s1 = inlined_call_operand.hbm [shape: f32[2,8,480], index: 1, kind: input, shape index: {}]   ;;  %s396_s2 = inlined_call_operand.hbm [shape: f32[8,480], index: 2, kind: input, shape index: {}]   ;;  %s397_s3 = inlined_call_operand.vmem [shape: f32[8,32], index: 3, kind: input, shape index: {}]   ;;  %s398_s4 = inlined_call_operand.vmem [shape: f32[21,33], index: 4, kind: input, shape index: {}]   ;;  %s399_s5 = inlined_call_operand.vmem [shape: f32[1,33], index: 5, kind: input, shape index: {}]   ;;  %s400_s6 = inlined_call_operand.hbm [shape: f32[2,8,512], index: 6, kind: output, shape index: {}]  }
   0x1   :  { %12 = vsyncpa [#allocation6], 0 }
   0x2   :  { %13 = vsyncpa [#allocation4], 0  ;;  %s20_s23 = sshll.u32 %s395_s1, 4  ;;  %s312_s24 = smov [#allocation2]   ;;  %s21_s23 = int_to_ptr.hbm [resolvable:$true] %s20_s23 }
   0x3   :  { %s22_s25 = sshll.u32 %s312_s24, 4  ;;  %s34_s28 = sshll.u32 %s396_s2, 4  ;;  %s23_s25 = int_to_ptr.vmem [resolvable:$true] %s22_s25  ;;  %s35_s28 = int_to_ptr.hbm [resolvable:$true] %s34_s28 }
   0x4   :  { %s313_s29 = smov 512   ;;  %s314_s30 = smov 32  }
   0x5   :  { %28 = dma.hbm_to_vmem [thread:$0]  %s21_s23, 1024, %s23_s25, [#allocation3], %s313_s29, %s313_s29, %s314_s30  }
   0x6   :  { %s315_s7 = smov [#allocation5]  }
   0x7   :  { %s36_s8 = sshll.u32 %s315_s7, 4  ;;  %s37_s8 = int_to_ptr.vmem [resolvable:$true] %s36_s8 }
   0x8   :  { %39 = dma.hbm_to_vmem [thread:$0]  %s35_s28, 512, %s37_s8, [#allocation6]  }
   0x9   :  { %306 = dma.done.wait [#allocation3], 1024  }
   0xa   :  { %307 = vsyncadd [#allocation3], 4294966272 }
   0xb   :  { %308 = dma.done.wait [#allocation6], 512  }
   0xc   :  { %309 = vsyncadd [#allocation6], 4294966784  ;;  %vm106_vm0 = vcmask 1044480   ;;  %v54_v0 = vld [vmem:[%s394_s0] sm:$0xff]  ;;  %v94_v1 = vld [vmem:[%s398_s4 + $0x10] sm:$0x1f] }
   0xd   :  { %s316_s11 = smov 7   ;;  %v65_v2 = vrot.slane %v54_v0, 1  ;;  %216 = vmatpush.msk.msra.mxu0 %vm106_vm0, %v94_v1  ;;  %v93_v3 = vld [vmem:[%s398_s4 + $0x8] sm:$0xff]  ;;  %219 = vmatpush.msk.msra.mxu1 %vm106_vm0, %v94_v1  ;;  %s317_s14 = smov 14   ;;  %v92_v6 = vld [vmem:[%s398_s4] sm:$0xff]  ;;  %v58_v7 = vrot.slane %v54_v0, 7 }
   0xe   :  { %72 = vrot.lane.b32.xlu0 %v54_v0, %s316_s11  ;;  %v55_v4 = vld [vmem:[%s394_s0 + $0x8] sm:$0xff]  ;;  %vm86_vm1 = vcmask 56320   ;;  %vm89_vm2 = vcmask 113664   ;;  %vm99_vm3 = vcmask 171008   ;;  %v318_v17 = vmov 32   ;;  %v133_v23 = vld [vmem:[#allocation2] sm:$0xff] }
   0xf   :  { %80 = vrot.lane.b32.xlu1 %v65_v2, %s317_s14  ;;  %124 = vmatpush.msra.mxu0 %v93_v3  ;;  %v66_v5 = vrot.slane %v55_v4, 1  ;;  %v59_v12 = vrot.slane %v55_v4, 7  ;;  %v233_v18 = vld [vmem:[%s399_s5] ss:$0 sm:$0xff]  ;;  %v134_v24 = vld [vmem:[#allocation2 + $0x8] sm:$0xff]  ;;  %v135_v25 = vld [vmem:[#allocation2 + $0x10] sm:$0xff] }
  0x10   :  { %220 = vmatpush.msra.mxu1 %v93_v3  ;;  %231 = vset.pattern.permute.xlu2 %v318_v17  ;;  %v141_v26 = vld [vmem:[#allocation5] sm:$0xff]  ;;  %v142_v27 = vld [vmem:[#allocation5 + $0x8] sm:$0xff]  ;;  %v143_v28 = vld [vmem:[#allocation5 + $0x10] sm:$0xff]  ;;  %vm174_vm4 = vcmask 785408   ;;  %s319_s5 = smov 96   ;;  %vm193_vm5 = vcmask 1048320  }
  0x11   :  { %125 = vmatpush.msra.mxu0 %v92_v6  ;;  %232 = vset.pattern.permute.xlu0 %v318_v17  ;;  %v136_v29 = vld [vmem:[#allocation2 + $0x18] sm:$0xff]  ;;  %v180_v31 = vld [vmem:[%s397_s3] sm:$0xff]  ;;  %v145_v32 = vadd.f32 %v141_v26, %v133_v23  ;;  %v146_v33 = vadd.f32 %v142_v27, %v134_v24  ;;  %v147_v34 = vadd.f32 %v143_v28, %v135_v25  ;;  %v138_v44 = vld [vmem:[#allocation2 + $0x28] sm:$0xff]  ;;  %s320_s3 = smov [#allocation7]   ;;  %s202_s24 = sshll.u32 %s400_s6, 4  ;;  %s203_s24 = int_to_ptr.hbm [resolvable:$true] %s202_s24 }
  0x12   :  { %221 = vmatpush.msra.mxu1 %v92_v6  ;;  %v144_v30 = vld [vmem:[#allocation5 + $0x18] sm:$0xff]  ;;  %v137_v43 = vld [vmem:[#allocation2 + $0x20] sm:$0xff]  ;;  %v139_v45 = vld [vmem:[#allocation2 + $0x30] sm:$0xff]  ;;  %v150_v48 = vadd.f32 %v142_v27, %v138_v44  ;;  %s200_s21 = sshll.u32 %s320_s3, 4  ;;  %s201_s21 = int_to_ptr.vmem [resolvable:$true] %s200_s21 }
  0x13   :  { %v148_v35 = vadd.f32 %v144_v30, %v136_v29  ;;  %v140_v46 = vld [vmem:[#allocation2 + $0x38] sm:$0xff]  ;;  %v149_v47 = vadd.f32 %v141_v26, %v137_v43  ;;  %v151_v49 = vadd.f32 %v143_v28, %v139_v45 }
  0x14   :  { %v152_v50 = vadd.f32 %v144_v30, %v140_v46 }
  0x16   :  { %74 = vrot.lane.b32.xlu0 %v55_v4, %s316_s11 }
  0x17   :  { %82 = vrot.lane.b32.xlu1 %v66_v5, %s317_s14 }
  0x80   :  { %v73_v8 = vpop.permute.xlu0 %72 }
  0x81   :  { %v87_v9 = vsel %vm86_vm1, %v58_v7, %v73_v8  ;;  %v81_v10 = vpop.permute.xlu1 %80 }
  0x82   :  { %v90_v11 = vsel %vm89_vm2, %v87_v9, %v81_v10 }
  0x83   :  { %217 = vmatmul.msk.f32.vlgmr.msra.gmra.mxu0 %vm99_vm3, %v90_v11 }
  0x88   :  { %v75_v13 = vpop.permute.xlu0 %74 }
  0x89   :  { %v88_v14 = vsel %vm86_vm1, %v59_v12, %v75_v13  ;;  %v83_v15 = vpop.permute.xlu1 %82 }
  0x8a   :  { %v91_v16 = vsel %vm89_vm2, %v88_v14, %v83_v15 }
  0x8b   :  { %218 = vmatmul.msk.f32.vlgmr.msra.gmra.mxu1 %vm99_vm3, %v91_v16 }
 0x100   :  { %v127_v19 = vpop.f32.mrf.mxu0 }
 0x101   :  { %v128_v20 = vadd.f32 %v233_v18, %v127_v19 }
 0x103   :  { %155 = vperm.xlu2 %231, %v128_v20   ;;  %v181_v36 = vadd.f32 %v180_v31, %v128_v20 }
 0x108   :  { %v130_v21 = vpop.f32.mrf.mxu1 }
 0x109   :  { %v131_v22 = vadd.f32 %v233_v18, %v130_v21 }
 0x10b   :  { %160 = vperm.xlu2 %231, %v131_v22   ;;  %v182_v51 = vadd.f32 %v180_v31, %v131_v22 }
 0x15d   :  { %v156_v37 = vpop.permute.xlu2 %155 }
 0x15e   :  { %v163_v38 = vadd.f32 %v156_v37, %v145_v32  ;;  %v164_v39 = vadd.f32 %v156_v37, %v146_v33  ;;  %v165_v40 = vadd.f32 %v156_v37, %v147_v34  ;;  %v166_v41 = vadd.f32 %v156_v37, %v148_v35 }
 0x15f   :  { %v183_v42 = vadd.f32 %v181_v36, %v156_v37 }
 0x160   :  { %171 = vst [vmem:[#allocation7] sm:$0xff] %v163_v38 }
 0x161   :  { %172 = vst [vmem:[#allocation7 + $0x8] sm:$0xff] %v164_v39  ;;  %187 = vrot.lane.b32.xlu0 %v183_v42, %s319_s5 }
 0x162   :  { %173 = vst [vmem:[#allocation7 + $0x10] sm:$0xff] %v165_v40 }
 0x163   :  { %175 = vst.msk [vmem:[#allocation7 + $0x18] sm:$0xff] %vm174_vm4, %v166_v41 }
 0x165   :  { %v161_v52 = vpop.permute.xlu2 %160 }
 0x166   :  { %v167_v53 = vadd.f32 %v161_v52, %v149_v47  ;;  %v168_v54 = vadd.f32 %v161_v52, %v150_v48  ;;  %v169_v55 = vadd.f32 %v161_v52, %v151_v49  ;;  %v170_v56 = vadd.f32 %v161_v52, %v152_v50 }
 0x167   :  { %v184_v57 = vadd.f32 %v182_v51, %v161_v52 }
 0x168   :  { %176 = vst [vmem:[#allocation7 + $0x20] sm:$0xff] %v167_v53 }
 0x169   :  { %177 = vst [vmem:[#allocation7 + $0x28] sm:$0xff] %v168_v54  ;;  %189 = vrot.lane.b32.xlu1 %v184_v57, %s319_s5 }
 0x16a   :  { %178 = vst [vmem:[#allocation7 + $0x30] sm:$0xff] %v169_v55 }
 0x16b   :  { %179 = vst.msk [vmem:[#allocation7 + $0x38] sm:$0xff] %vm174_vm4, %v170_v56 }
 0x1d3   :  { %v188_v58 = vpop.permute.xlu0 %187 }
 0x1d4   :  { %194 = vst.msk [vmem:[#allocation7 + $0x18] sm:$0xff] %vm193_vm5, %v188_v58 }
 0x1db   :  { %v190_v59 = vpop.permute.xlu1 %189 }
 0x1dc   :  { %195 = vst.msk [vmem:[#allocation7 + $0x38] sm:$0xff] %vm193_vm5, %v190_v59 }
 0x1dd   :  { %208 = dma.vmem_to_hbm [thread:$0]  %s201_s21, 1024, %s203_s24, [#allocation4], %s313_s29, %s313_s29, %s314_s30  }
 0x1de   :  { %310 = dma.done.wait [#allocation4], 1024  }
 0x1df   :  { %311 = vsyncadd [#allocation4], 4294966272 }
 0x1e0   :  { %213 = vsyncpa [#allocation3], 1 }
 0x1e1   :  { %214 = vsyncpa [#allocation6], 1 }
 0x1e2   :  { %215 = vsyncpa [#allocation4], 1 }

</bundles_post_ra>
